<compile_context>
chip_gen: v6e
topology: v6e:2x2x1
jax: 0.10.0
libtpu: 0.0.40
codegen_flags: <defaults>
</compile_context>

<pallas_src>
import jax
import jax.numpy as jnp
from jax import lax
from jax.experimental import pallas as pl
from jax.experimental.pallas import tpu as pltpu


def _ce_kernel(x_ref, w_ref, b_ref, y_ref, out_ref, acc_ref):
    i = pl.program_id(0)

    @pl.when(i == 0)
    def _():
        acc_ref[0] = 0.0

    # logits = x @ W^T + b, contracting over D on the (C, D) weight as-is
    # (MXU matmul, f32 accumulate; no transpose needed).
    logits = lax.dot_general(
        x_ref[...], w_ref[...],
        dimension_numbers=(((1,), (1,)), ((), ())),
        preferred_element_type=jnp.float32,
    ) + b_ref[...]                                            # (TN, C)

    # numerically-stable log-sum-exp along the class axis
    m = jnp.max(logits, axis=-1, keepdims=True)
    z = logits - m
    lse = jnp.log(jnp.sum(jnp.exp(z), axis=-1, keepdims=True))  # (TN, 1)

    # per-row CE(sum) = lse - z[target]; select the target column with a
    # compare + where (no one-hot materialization, no full logp array).
    tn, c = logits.shape
    cls_ids = lax.broadcasted_iota(jnp.int32, (tn, c), 1)       # (TN, C)
    z_tgt = jnp.where(cls_ids == y_ref[...], z, 0.0)            # (TN, C)

    acc_ref[0] += jnp.sum(lse) - jnp.sum(z_tgt)

    @pl.when(i == pl.num_programs(0) - 1)
    def _():
        out_ref[0] = acc_ref[0]


def softmax_forward(x, weight, bias, y, *, tile_n=128):
    """x: (N, D) f32, weight: (C, D) f32, bias: (C,) f32, y: (N,) int
    -> scalar f32 == CrossEntropyLoss(size_average=False)(x @ W.T + b, y)."""
    n, d = x.shape
    c = weight.shape[0]

    tn = n if n <= tile_n else tile_n
    # TODO(synk): handle ragged batches (N % tn != 0) via row-validity masking;
    # also pad C to a multiple of 128 (with -inf bias on pad columns) for
    # lane-dense logits when this is generalized beyond tiny class counts.
    assert n % tn == 0, "batch must be divisible by the batch tile"

    b2 = bias.reshape(1, c).astype(jnp.float32)
    y2 = y.reshape(n, 1).astype(jnp.int32)

    out = pl.pallas_call(
        _ce_kernel,
        out_shape=jax.ShapeDtypeStruct((1,), jnp.float32),
        grid=(n // tn,),
        in_specs=[
            pl.BlockSpec((tn, d), lambda i: (i, 0)),   # batch-tiled activations
            pl.BlockSpec((c, d), lambda i: (0, 0)),    # weight, VMEM-resident
            pl.BlockSpec((1, c), lambda i: (0, 0)),    # bias, VMEM-resident
            pl.BlockSpec((tn, 1), lambda i: (i, 0)),   # batch-tiled labels
        ],
        out_specs=pl.BlockSpec(memory_space=pltpu.SMEM),
        scratch_shapes=[pltpu.SMEM((1,), jnp.float32)],
        compiler_params=pltpu.CompilerParams(
            dimension_semantics=("arbitrary",)),
    )(x.astype(jnp.float32), weight.astype(jnp.float32), b2, y2)
    return out[0]


if __name__ == "__main__":
    # Module config: softmax(output_dim=32, n_class=10); batch N=8
    N, D, C = 8, 32, 10

    key = jax.random.PRNGKey(0)
    kx, kw, kb, ky = jax.random.split(key, 4)

    x = jax.random.normal(kx, (N, D), dtype=jnp.float32)
    # Deterministic Linear params (synthetic; nn.Linear would use uniform init)
    bound = 1.0 / (D ** 0.5)
    weight = jax.random.uniform(kw, (C, D), minval=-bound, maxval=bound,
                                dtype=jnp.float32)
    bias = jax.random.uniform(kb, (C,), minval=-bound, maxval=bound,
                              dtype=jnp.float32)
    y = jax.random.randint(ky, (N,), 0, C, dtype=jnp.int32)

    loss = softmax_forward(x, weight, bias, y)
    jax.block_until_ready(loss)

    # Reference check in plain JAX
    logits = x @ weight.T + bias
    logp = jax.nn.log_softmax(logits, axis=-1)
    ref = -jnp.sum(logp[jnp.arange(N), y])
    assert jnp.allclose(loss, ref, rtol=1e-5, atol=1e-5), (loss, ref)

    print("KERNEL_OK")
</pallas_src>

<mosaic_0001>
module attributes {stable_mosaic.version = 11 : i64} {
  func.func @_ce_kernel(%arg0: i32, %arg1: memref<8x32xf32, #tpu.memory_space<vmem>>, %arg2: memref<10x32xf32, #tpu.memory_space<vmem>>, %arg3: memref<1x10xf32, #tpu.memory_space<vmem>>, %arg4: memref<8x1xi32, #tpu.memory_space<vmem>>, %arg5: memref<1xf32, #tpu.memory_space<smem>>, %arg6: memref<1xf32, #tpu.memory_space<smem>>) attributes {dimension_semantics = [#tpu.dimension_semantics<arbitrary>], iteration_bounds = array<i64: 1>, scalar_prefetch = 0 : i64, scratch_operands = 1 : i64, tpu.core_type = #tpu.core_type<tc>, window_params = [{transform_indices = @transform_0, window_bounds = array<i64: 8, 32>}, {pipeline_mode = #tpu.pipeline_mode<synchronous>, transform_indices = @transform_1, window_bounds = array<i64: 10, 32>}, {pipeline_mode = #tpu.pipeline_mode<synchronous>, transform_indices = @transform_2, window_bounds = array<i64: 1, 10>}, {transform_indices = @transform_3, window_bounds = array<i64: 8, 1>}, {transform_indices = @transform_4, window_bounds = array<i64: 1>}]} {
    %c0_i32 = arith.constant 0 : i32
    %0 = arith.cmpi eq, %arg0, %c0_i32 : i32
    %1 = arith.extui %0 : i1 to i32
    %c0_i32_0 = arith.constant 0 : i32
    %2 = arith.cmpi ne, %1, %c0_i32_0 : i32
    scf.if %2 {
      %cst_17 = arith.constant 0.000000e+00 : f32
      %c0_18 = arith.constant 0 : index
      %38 = memref.load %arg6[%c0_18] : memref<1xf32, #tpu.memory_space<smem>>
      memref.store %cst_17, %arg6[%c0_18] : memref<1xf32, #tpu.memory_space<smem>>
    } else {
    }
    %c0 = arith.constant 0 : index
    %c0_1 = arith.constant 0 : index
    %3 = vector.load %arg1[%c0, %c0_1] : memref<8x32xf32, #tpu.memory_space<vmem>>, vector<8x32xf32>
    %c0_2 = arith.constant 0 : index
    %c0_3 = arith.constant 0 : index
    %4 = vector.load %arg2[%c0_2, %c0_3] : memref<10x32xf32, #tpu.memory_space<vmem>>, vector<10x32xf32>
    %cst = arith.constant dense<0.000000e+00> : vector<8x10xf32>
    %5 = tpu.matmul %3, %4, %cst {dimension_numbers = #tpu.dot_dimension_numbers<[1], [1], [0], [0], [0, 0, 1, 0], [], []>} : vector<8x32xf32>, vector<10x32xf32>, vector<8x10xf32> -> vector<8x10xf32>
    %c0_4 = arith.constant 0 : index
    %c0_5 = arith.constant 0 : index
    %6 = vector.load %arg3[%c0_4, %c0_5] : memref<1x10xf32, #tpu.memory_space<vmem>>, vector<1x10xf32>
    %7 = vector.broadcast %6 : vector<1x10xf32> to vector<8x10xf32>
    %8 = arith.addf %5, %7 : vector<8x10xf32>
    %cst_6 = arith.constant dense<0xFF800000> : vector<8xf32>
    %9 = vector.multi_reduction <maximumf>, %8, %cst_6 [1] : vector<8x10xf32> to vector<8xf32>
    %10 = vector.shape_cast %9 : vector<8xf32> to vector<8x1xf32>
    %11 = vector.broadcast %10 : vector<8x1xf32> to vector<8x10xf32>
    %12 = arith.subf %8, %11 : vector<8x10xf32>
    %13 = math.exp %12 : vector<8x10xf32>
    %cst_7 = arith.constant dense<0.000000e+00> : vector<8xf32>
    %14 = vector.multi_reduction <add>, %13, %cst_7 [1] : vector<8x10xf32> to vector<8xf32>
    %15 = vector.shape_cast %14 : vector<8xf32> to vector<8x1xf32>
    %16 = math.log %15 : vector<8x1xf32>
    %17 = tpu.iota {dimensions = array<i32: 1>} : vector<8x10xi32>
    %c0_8 = arith.constant 0 : index
    %c0_9 = arith.constant 0 : index
    %18 = vector.load %arg4[%c0_8, %c0_9] : memref<8x1xi32, #tpu.memory_space<vmem>>, vector<8x1xi32>
    %19 = vector.broadcast %18 : vector<8x1xi32> to vector<8x10xi32>
    %20 = arith.cmpi eq, %17, %19 : vector<8x10xi32>
    %cst_10 = arith.constant 0.000000e+00 : f32
    %21 = vector.broadcast %cst_10 : f32 to vector<8x10xf32>
    %22 = arith.select %20, %12, %21 : vector<8x10xi1>, vector<8x10xf32>
    %c0_11 = arith.constant 0 : index
    %23 = memref.load %arg6[%c0_11] : memref<1xf32, #tpu.memory_space<smem>>
    %24 = vector.shape_cast %16 : vector<8x1xf32> to vector<1x8x1xf32>
    %cst_12 = arith.constant dense<0.000000e+00> : vector<1xf32>
    %25 = vector.multi_reduction <add>, %24, %cst_12 [1, 2] : vector<1x8x1xf32> to vector<1xf32>
    %26 = vector.shape_cast %25 : vector<1xf32> to vector<1x1x1xf32>
    %27 = vector.extract %26[0, 0, 0] : f32 from vector<1x1x1xf32>
    %28 = vector.shape_cast %22 : vector<8x10xf32> to vector<1x8x10xf32>
    %cst_13 = arith.constant dense<0.000000e+00> : vector<1xf32>
    %29 = vector.multi_reduction <add>, %28, %cst_13 [1, 2] : vector<1x8x10xf32> to vector<1xf32>
    %30 = vector.shape_cast %29 : vector<1xf32> to vector<1x1x1xf32>
    %31 = vector.extract %30[0, 0, 0] : f32 from vector<1x1x1xf32>
    %32 = arith.subf %27, %31 : f32
    %33 = arith.addf %23, %32 : f32
    %c0_14 = arith.constant 0 : index
    %34 = memref.load %arg6[%c0_14] : memref<1xf32, #tpu.memory_space<smem>>
    memref.store %33, %arg6[%c0_14] : memref<1xf32, #tpu.memory_space<smem>>
    %c0_i32_15 = arith.constant 0 : i32
    %35 = arith.cmpi eq, %arg0, %c0_i32_15 : i32
    %36 = arith.extui %35 : i1 to i32
    %c0_i32_16 = arith.constant 0 : i32
    %37 = arith.cmpi ne, %36, %c0_i32_16 : i32
    scf.if %37 {
      %c0_17 = arith.constant 0 : index
      %38 = memref.load %arg6[%c0_17] : memref<1xf32, #tpu.memory_space<smem>>
      %c0_18 = arith.constant 0 : index
      %39 = memref.load %arg5[%c0_18] : memref<1xf32, #tpu.memory_space<smem>>
      memref.store %38, %arg5[%c0_18] : memref<1xf32, #tpu.memory_space<smem>>
    } else {
    }
    return
  }
  func.func @transform_0(%arg0: i32) -> (i32, i32) {
    %c0_i32 = arith.constant 0 : i32
    %c0_i32_0 = arith.constant 0 : i32
    return %arg0, %c0_i32 : i32, i32
  }
  func.func @transform_1(%arg0: i32) -> (i32, i32) {
    %c0_i32 = arith.constant 0 : i32
    %c0_i32_0 = arith.constant 0 : i32
    %c0_i32_1 = arith.constant 0 : i32
    return %c0_i32, %c0_i32_0 : i32, i32
  }
  func.func @transform_2(%arg0: i32) -> (i32, i32) {
    %c0_i32 = arith.constant 0 : i32
    %c0_i32_0 = arith.constant 0 : i32
    %c0_i32_1 = arith.constant 0 : i32
    return %c0_i32, %c0_i32_0 : i32, i32
  }
  func.func @transform_3(%arg0: i32) -> (i32, i32) {
    %c0_i32 = arith.constant 0 : i32
    %c0_i32_0 = arith.constant 0 : i32
    return %arg0, %c0_i32 : i32, i32
  }
  func.func @transform_4(%arg0: i32) -> i32 {
    %c0_i32 = arith.constant 0 : i32
    %c0_i32_0 = arith.constant 0 : i32
    return %c0_i32 : i32
  }
}

</mosaic_0001>

<bundles_post_ra>
// kernel: tpu_custom_call.1
= control target key start
LH: loop header
LB: loop body
LE: loop exit
PB: predicated region body
PF: predicated region fallthrough
CT: control target
= control target key end

     0   :  { %9 = vsyncpa [#allocation4], 0  ;;  %s307_s0 = inlined_call_operand.vmem [shape: f32[8,32], index: 0, kind: input, shape index: {}]   ;;  %s308_s1 = inlined_call_operand.hbm [shape: f32[10,32], index: 1, kind: input, shape index: {}]   ;;  %s309_s2 = inlined_call_operand.vmem [shape: f32[1,10], index: 2, kind: input, shape index: {}]   ;;  %s310_s3 = inlined_call_operand.vmem [shape: s32[8,1], index: 3, kind: input, shape index: {}]   ;;  %s311_s4 = inlined_call_operand.hbm [shape: f32[1], index: 4, kind: output, shape index: {}]  }
   0x1   :  { %10 = vsyncpa [#allocation5], 0  ;;  %s257_s15 = smov [#allocation3]  }
   0x2   :  { %s18_s16 = sshll.u32 %s257_s15, 4  ;;  %s19_s16 = int_to_ptr.vmem [resolvable:$true] %s18_s16 }
   0x3   :  { %s233_s17 = scalar_lea.vmem %s19_s16, 256  ;;  %p238_p1 = scmp.lt.s32.totalorder %s19_s16, %s19_s16 }
   0x4   :  { %p234_p0 = scmp.ne.s32.totalorder %s19_s16, %s233_s17  ;;  %p239_p2 = scmp.lt.s32.totalorder %s233_s17, %s233_s17 }
   0x6   :  { %p240_p3 = por %p239_p2, %p238_p1 }
   0x8   :  { %p241_p4 = pnand %p240_p3, %p234_p0 }
   0xa   :  { %244 = shalt.err (!%p241_p4)
}
   0xb   :  { %s258_s18 = smov 128   ;;  %s259_s19 = smov 8  }
   0xc   :  { %24 = dma.hbm_to_vmem [thread:$0]  %s308_s1, 256, %s19_s16, [#allocation4], %s258_s18, %s258_s18, %s259_s19  }
   0xd   :  { %253 = dma.done.wait [#allocation4], 256  }
   0xe   :  { %254 = vsyncadd [#allocation4], 4294967040  ;;  %v260_v0 = vmov 0.0   ;;  %vm261_vm0 = vmmov 0   ;;  %vm48_vm1 = vcmask 261120   ;;  %v39_v2 = vld [vmem:[#allocation3] sm:$0xff]  ;;  %v140_v14 = vlaneseq }
   0xf   :  { %201 = vmatprep.subr.mxu0 %v260_v0  ;;  %205 = vmatprep.mubr.msk.f32.mxu0 %vm261_vm0, %v260_v0  ;;  %v40_v1 = vld [vmem:[#allocation3 + $0x8] sm:$0x3]  ;;  %v38_v3 = vld [vmem:[%s307_s0] sm:$0xff]  ;;  %v262_v5 = vmov 0   ;;  %vm128_vm2 = vcmask 80896   ;;  %vm149_vm4 = vcmask 7168  }
  0x10   :  { %202 = vmatpush3.xpose.msk.msra.mxu0 %vm48_vm1, %v40_v1  ;;  %v142_v4 = vld [vmem:[%s310_s3] sm:$0xff]  ;;  %219 = vset.pattern.permute.xlu1 %v262_v5  ;;  %v141_v15 = vand.u32 127, %v140_v14  ;;  %s263_s27 = smov [#allocation6]  }
  0x11   :  { %203 = vmatprep.subr.mxu0 %v260_v0  ;;  %220 = vset.pattern.permute.xlu0 %v262_v5  ;;  %v194_v6 = vld [vmem:[%s309_s2] ss:$0 sm:$0xff] }
  0x12   :  { %144 = vperm.xlu1 %219, %v142_v4  }
  0x14   :  { %204 = vmatpush3.xpose.msk.msra.mxu0 %vm48_vm1, %v39_v2 }
  0x17   :  { %206 = vmatmul.mubr.msk.f32.vlgmr.msra.gmra.mxu0 %vm48_vm1, %v38_v3 }
  0x8d   :  { %v145_v16 = vpop.permute.xlu1 %144 }
  0x8e   :  { %vm146_vm3 = vcmp.eq.s32.totalorder %v141_v15, %v145_v16 }
  0xd7   :  { %v124_v7 = vpop.f32.mrf.mxu0 }
  0xd8   :  { %v125_v8 = vadd.f32 %v194_v6, %v124_v7 }
  0xd9   :  { %v207_v9 = vpop.f32.mrf.mxu0 }
  0xda   :  { %v129_v10 = vsel %vm128_vm2, %v125_v8, -inf }
  0xdb   :  { %130 = vmax.xlane.f32.xlu0 %v129_v10 }
 0x164   :  { %v131_v11 = vpop.xlane.xlu0 %130 }
 0x165   :  { %v132_v12 = vsub.f32 %v125_v8, %v131_v11 }
 0x167   :  { %v133_v13 = vmul.f32 1.442695, %v132_v12  ;;  %v147_v19 = vsel %vm146_vm3, %v132_v12, 0.0 }
 0x168   :  { %v160_v20 = vsel %vm128_vm2, %v147_v19, 0.0 }
 0x169   :  { %221 = vpow2.f32 %v133_v13 }
 0x176   :  { %v222_v17 = vpop.eup %221 }
 0x177   :  { %v135_v18 = vsel %vm128_vm2, %v222_v17, 0.0 }
 0x178   :  { %136 = vadd.xlane.f32.xlu0 %v135_v18 }
 0x17c   :  { %161 = vadd.xlane.f32.xlu0 %v160_v20 }
 0x201   :  { %v137_v21 = vpop.xlane.xlu0 %136 }
 0x202   :  { %223 = vlog2.f32 %v137_v21 }
 0x205   :  { %v162_v25 = vpop.xlane.xlu0 %161 }
 0x206   :  { %v163_v26 = vrot.slane %v162_v25, 4 }
 0x208   :  { %v164_v27 = vadd.f32 %v163_v26, %v162_v25 }
 0x20a   :  { %v165_v28 = vrot.slane %v164_v27, 2 }
 0x20c   :  { %v166_v32 = vadd.f32 %v165_v28, %v164_v27 }
 0x20e   :  { %v167_v35 = vrot.slane %v166_v32, 1 }
 0x20f   :  { %v224_v22 = vpop.eup %223 }
 0x210   :  { %v139_v23 = vmul.f32 0.6931472, %v224_v22  ;;  %v168_v38 = vadd.f32 %v167_v35, %v166_v32 }
 0x212   :  { %v150_v24 = vsel %vm149_vm4, %v139_v23, 0.0 }
 0x213   :  { %151 = vadd.xlane.f32.xlu1 %v150_v24 }
 0x29c   :  { %v152_v29 = vpop.xlane.xlu1 %151 }
 0x29d   :  { %v153_v30 = vrot.slane %v152_v29, 4 }
 0x29f   :  { %v154_v31 = vadd.f32 %v153_v30, %v152_v29 }
 0x2a1   :  { %v155_v33 = vrot.slane %v154_v31, 2 }
 0x2a3   :  { %v156_v34 = vadd.f32 %v155_v33, %v154_v31 }
 0x2a5   :  { %v157_v36 = vrot.slane %v156_v34, 1 }
 0x2a7   :  { %v158_v37 = vadd.f32 %v157_v36, %v156_v34 }
 0x2a9   :  { %208 = vpush %v158_v37 }
 0x2aa   :  { %210 = vpush %v168_v38 }
 0x2da   :  { %s209_s0 = spop %208 }
 0x2db   :  { %s211_s2 = spop %210 }
 0x2dc   :  { %s170_s3 = ssub.f32 %s209_s0, %s211_s2 }
 0x2de   :  { %179 = sst [smem:[#allocation6]] %s170_s3 }
 0x2df   :  { %187 = dma.smem_to_hbm %s263_s27, 16, %s311_s4, [#allocation5]  }
 0x2e0   :  { %255 = dma.done.wait [#allocation5], 16  }
 0x2e1   :  { %256 = vsyncadd [#allocation5], 4294967280 }
 0x2e2   :  { %191 = sfence }
 0x2e3   :  { %192 = vsyncpa [#allocation4], 1 }
 0x2e4   :  { %193 = vsyncpa [#allocation5], 1 }

</bundles_post_ra>
